<compile_context>
chip_gen: v6e
topology: v6e:2x2x1
jax: 0.10.0
libtpu: 0.0.40
codegen_flags: <defaults>
</compile_context>

<pallas_src>
import functools
from math import sqrt

import jax
import jax.numpy as jnp
from jax.experimental import pallas as pl
from jax.experimental.pallas import tpu as pltpu

LANE = 128  # TPU lane width; hidden / w3-column dims are padded to a multiple of this.


def _round_up(x, m):
    return (x + m - 1) // m * m


def _choose_block_b(B):
    """Batch tile: big enough to fill the MXU and amortize ~0.35 us/grid-step overhead,
    >=2 grid steps once B >= 256 so v7x's two TensorCores both get 'parallel' work,
    and >=16 rows so bf16 intermediates keep the (16,128) packing."""
    if B < 256:
        return max(16, _round_up(B, 16))          # single grid step for tiny batches
    if B < 2048:
        return _round_up(pl.cdiv(B, 2), 128)      # exactly 2 steps, 128-row aligned
    return 1024                                   # many 1024-row steps (multiple of 256)


def actor_kernel(x_ref, w1_ref, b1_ref, w2_ref, b2_ref, w3_ref, b3_ref, o_ref,
                 *, nb_action, precision):
    cdt = w1_ref.dtype  # MXU compute dtype (bf16 in production, f32 for verification)
    # Cast to the MXU dtype here (in VMEM) instead of materializing a padded copy in HBM.
    x = x_ref[...].astype(cdt)

    # Layer 1: Linear + ReLU (MXU matmul, f32 accumulate; elementwise math in f32)
    h1 = jnp.dot(x, w1_ref[...], preferred_element_type=jnp.float32, precision=precision)
    h1 = jnp.maximum(h1 + b1_ref[...], 0.0).astype(cdt)   # materialize at MXU dtype

    # Layer 2: Linear + ReLU
    h2 = jnp.dot(h1, w2_ref[...], preferred_element_type=jnp.float32, precision=precision)
    h2 = jnp.maximum(h2 + b2_ref[...], 0.0).astype(cdt)

    # Layer 3: Linear + Sigmoid; only the real nb_action columns are stored (lane-masked vst,
    # 16x less output HBM traffic than writing the 128-padded slab).
    z3 = jnp.dot(h2, w3_ref[...], preferred_element_type=jnp.float32, precision=precision)
    z3 = z3 + b3_ref[...]
    o_ref[...] = jax.nn.sigmoid(z3[:, :nb_action]).astype(o_ref.dtype)


def prepare_actor_params(params, compute_dtype=jnp.bfloat16):
    """Zero-pad hidden dims (and w3/b3 columns) to 128 lanes; cast weights to the MXU dtype.

    nb_obs (w1's K dim) is NOT padded: x is fed at its real width and cast in-kernel,
    so the input HBM stream carries only real bytes.  Do this once outside the loop.
    """
    def pad2(a, rows, cols):
        return jnp.pad(a, ((0, rows - a.shape[0]), (0, cols - a.shape[1])))

    w1, b1 = params["w1"], params["b1"]
    w2, b2 = params["w2"], params["b2"]
    w3, b3 = params["w3"], params["b3"]
    nb_obs, h1 = w1.shape
    _, h2 = w2.shape
    _, nb_action = w3.shape
    p_h1, p_h2, p_act = (_round_up(d, LANE) for d in (h1, h2, nb_action))

    prepared = {
        "w1": pad2(w1, nb_obs, p_h1).astype(compute_dtype),  # K dim kept at real nb_obs
        "b1": pad2(b1, 1, p_h1).astype(jnp.float32),
        "w2": pad2(w2, p_h1, p_h2).astype(compute_dtype),
        "b2": pad2(b2, 1, p_h2).astype(jnp.float32),
        "w3": pad2(w3, p_h2, p_act).astype(compute_dtype),
        "b3": pad2(b3, 1, p_act).astype(jnp.float32),
    }
    dims = {"nb_obs": nb_obs, "h1": h1, "h2": h2, "nb_action": nb_action}
    return prepared, dims


@functools.partial(jax.jit, static_argnames=("nb_action", "block_b"))
def actor_forward(x, prepared, *, nb_action, block_b=None):
    """x: (B, nb_obs) f32. prepared: output of prepare_actor_params. Returns (B, nb_action) f32."""
    w1, b1 = prepared["w1"], prepared["b1"]
    w2, b2 = prepared["w2"], prepared["b2"]
    w3, b3 = prepared["w3"], prepared["b3"]

    B, nb_obs = x.shape
    assert w1.shape[0] == nb_obs, "x feature width must match w1's input dim"
    p_h1 = w1.shape[1]
    p_h2 = w2.shape[1]
    p_act = w3.shape[1]
    compute_dtype = w1.dtype
    precision = (jax.lax.Precision.HIGHEST if compute_dtype == jnp.float32
                 else jax.lax.Precision.DEFAULT)

    if block_b is None:
        block_b = _choose_block_b(B)
    block_b = max(16, _round_up(int(block_b), 16))

    # Only the batch dim may need padding (same dtype, no feature pad -> identity when B divides).
    Bp = _round_up(B, block_b)
    xp = x if Bp == B else jnp.pad(x, ((0, Bp - B), (0, 0)))
    grid = (Bp // block_b,)

    itemsize = lambda a: jnp.dtype(a.dtype).itemsize
    flops = 2 * Bp * (nb_obs * p_h1 + p_h1 * p_h2 + p_h2 * p_act)
    transcendentals = Bp * p_act  # sigmoid (computed over the padded width)
    bytes_accessed = (
        Bp * nb_obs * itemsize(xp)                                        # real x bytes (f32)
        + sum(int(a.size) * itemsize(a) for a in (w1, b1, w2, b2, w3, b3))
        + Bp * nb_action * 4                                              # narrow f32 output
    )

    kernel = functools.partial(actor_kernel, nb_action=nb_action, precision=precision)

    # Weights/biases are tiny -> each grid step gets the full tensor with the same block
    # index, so Pallas keeps them resident (no re-DMA between consecutive steps).
    # TODO(synk): if profiles still show exposed x DMA, try pipeline_mode=pl.Buffered(3) on the x spec.
    out = pl.pallas_call(
        kernel,
        out_shape=jax.ShapeDtypeStruct((Bp, nb_action), jnp.float32),
        grid_spec=pltpu.PrefetchScalarGridSpec(
            num_scalar_prefetch=0,
            grid=grid,
            in_specs=[
                pl.BlockSpec((block_b, nb_obs), lambda i: (i, 0)),  # x tile, real width, f32
                pl.BlockSpec((nb_obs, p_h1), lambda i: (0, 0)),
                pl.BlockSpec((1, p_h1), lambda i: (0, 0)),
                pl.BlockSpec((p_h1, p_h2), lambda i: (0, 0)),
                pl.BlockSpec((1, p_h2), lambda i: (0, 0)),
                pl.BlockSpec((p_h2, p_act), lambda i: (0, 0)),
                pl.BlockSpec((1, p_act), lambda i: (0, 0)),
            ],
            out_specs=pl.BlockSpec((block_b, nb_action), lambda i: (i, 0)),
        ),
        compiler_params=pltpu.CompilerParams(
            dimension_semantics=("parallel",),
        ),
        cost_estimate=pl.CostEstimate(
            flops=flops,
            transcendentals=transcendentals,
            bytes_accessed=bytes_accessed,
        ),
    )(xp, w1, b1, w2, b2, w3, b3)

    return out if Bp == B else out[:B]


def init_actor_params(key, mu_layer, nb_obs, nb_action):
    """Matches the PyTorch Actor's custom init:
       ln1/ln2 weights ~ U(-1/sqrt(fan_in*fan_out), +...), ln3 weights ~ U(-0.003, 0.003);
       biases follow PyTorch nn.Linear defaults: U(-1/sqrt(fan_in), 1/sqrt(fan_in)).
       Weights are generated in PyTorch (out,in) layout then transposed to (in,out)."""
    k1, k2, k3, kb1, kb2, kb3 = jax.random.split(key, 6)

    f1 = 1.0 / sqrt(int(nb_obs * mu_layer[0]))
    w1 = jax.random.uniform(k1, (mu_layer[0], nb_obs), jnp.float32, -f1, f1).T
    b1 = jax.random.uniform(kb1, (1, mu_layer[0]), jnp.float32,
                            -1.0 / sqrt(nb_obs), 1.0 / sqrt(nb_obs))

    f2 = 1.0 / sqrt(int(mu_layer[0] * mu_layer[1]))
    w2 = jax.random.uniform(k2, (mu_layer[1], mu_layer[0]), jnp.float32, -f2, f2).T
    b2 = jax.random.uniform(kb2, (1, mu_layer[1]), jnp.float32,
                            -1.0 / sqrt(mu_layer[0]), 1.0 / sqrt(mu_layer[0]))

    w3 = jax.random.uniform(k3, (nb_action, mu_layer[1]), jnp.float32, -0.003, 0.003).T
    b3 = jax.random.uniform(kb3, (1, nb_action), jnp.float32,
                            -1.0 / sqrt(mu_layer[1]), 1.0 / sqrt(mu_layer[1]))

    return {"w1": w1, "b1": b1, "w2": w2, "b2": b2, "w3": w3, "b3": b3}


def actor_forward_ref(x, p):
    h1 = jnp.maximum(x @ p["w1"] + p["b1"], 0.0)
    h2 = jnp.maximum(h1 @ p["w2"] + p["b2"], 0.0)
    return jax.nn.sigmoid(h2 @ p["w3"] + p["b3"])


if __name__ == "__main__":
    key = jax.random.PRNGKey(0)
    kx, kx2, kp = jax.random.split(key, 3)

    # Small shapes implied by the module: obs -> mu_layer[0] -> mu_layer[1] -> action
    batch = 8
    nb_obs = 32
    mu_layer = (64, 32)
    nb_action = 8

    x = jax.random.normal(kx, (batch, nb_obs), jnp.float32)
    params = init_actor_params(kp, mu_layer, nb_obs, nb_action)
    ref = actor_forward_ref(x, params)

    # f32 compute path (precision=HIGHEST inside the kernel): tight semantics check.
    prep_f32, _ = prepare_actor_params(params, compute_dtype=jnp.float32)
    out_f32 = jax.block_until_ready(actor_forward(x, prep_f32, nb_action=nb_action))
    assert out_f32.shape == (batch, nb_action)
    assert jnp.allclose(out_f32, ref, atol=1e-5, rtol=1e-5), "f32 kernel mismatch vs reference"

    # bf16 MXU path (production default on v6e/v7x): looser tolerance for MXU bf16 rounding.
    prep_bf16, _ = prepare_actor_params(params, compute_dtype=jnp.bfloat16)
    out_bf16 = jax.block_until_ready(actor_forward(x, prep_bf16, nb_action=nb_action))
    assert out_bf16.shape == (batch, nb_action)
    assert jnp.allclose(out_bf16, ref, atol=2e-2, rtol=2e-2), "bf16 kernel mismatch vs reference"

    # Multi-grid-step / batch-padding path (2 steps of 256 rows, batch padded 300 -> 512).
    x_big = jax.random.normal(kx2, (300, nb_obs), jnp.float32)
    ref_big = actor_forward_ref(x_big, params)
    out_big = jax.block_until_ready(actor_forward(x_big, prep_bf16, nb_action=nb_action))
    assert out_big.shape == (300, nb_action)
    assert jnp.allclose(out_big, ref_big, atol=2e-2, rtol=2e-2), "multi-step kernel mismatch"

    print("KERNEL_OK")
</pallas_src>

<mosaic_0001>
module attributes {stable_mosaic.version = 11 : i64} {
  func.func @actor_kernel(%arg0: i32, %arg1: memref<16x32xf32, #tpu.memory_space<vmem>>, %arg2: memref<32x128xf32, #tpu.memory_space<vmem>>, %arg3: memref<1x128xf32, #tpu.memory_space<vmem>>, %arg4: memref<128x128xf32, #tpu.memory_space<vmem>>, %arg5: memref<1x128xf32, #tpu.memory_space<vmem>>, %arg6: memref<128x128xf32, #tpu.memory_space<vmem>>, %arg7: memref<1x128xf32, #tpu.memory_space<vmem>>, %arg8: memref<16x8xf32, #tpu.memory_space<vmem>>) attributes {dimension_semantics = [#tpu.dimension_semantics<parallel>], iteration_bounds = array<i64: 1>, scalar_prefetch = 0 : i64, scratch_operands = 0 : i64, tpu.core_type = #tpu.core_type<tc>, window_params = [{transform_indices = @transform_0, window_bounds = array<i64: 16, 32>}, {pipeline_mode = #tpu.pipeline_mode<synchronous>, transform_indices = @transform_1, window_bounds = array<i64: 32, 128>}, {pipeline_mode = #tpu.pipeline_mode<synchronous>, transform_indices = @transform_2, window_bounds = array<i64: 1, 128>}, {pipeline_mode = #tpu.pipeline_mode<synchronous>, transform_indices = @transform_3, window_bounds = array<i64: 128, 128>}, {pipeline_mode = #tpu.pipeline_mode<synchronous>, transform_indices = @transform_4, window_bounds = array<i64: 1, 128>}, {pipeline_mode = #tpu.pipeline_mode<synchronous>, transform_indices = @transform_5, window_bounds = array<i64: 128, 128>}, {pipeline_mode = #tpu.pipeline_mode<synchronous>, transform_indices = @transform_6, window_bounds = array<i64: 1, 128>}, {transform_indices = @transform_7, window_bounds = array<i64: 16, 8>}]} {
    %c0 = arith.constant 0 : index
    %c0_0 = arith.constant 0 : index
    %0 = vector.load %arg1[%c0, %c0_0] : memref<16x32xf32, #tpu.memory_space<vmem>>, vector<16x32xf32>
    %c0_1 = arith.constant 0 : index
    %c0_2 = arith.constant 0 : index
    %1 = vector.load %arg2[%c0_1, %c0_2] : memref<32x128xf32, #tpu.memory_space<vmem>>, vector<32x128xf32>
    %cst = arith.constant dense<0.000000e+00> : vector<16x128xf32>
    %2 = tpu.matmul %0, %1, %cst {dimension_numbers = #tpu.dot_dimension_numbers<[1], [0], [0], [1], [0, 0, 1, 1], [], []>, precision = #tpu.contract_precision<fp32>} : vector<16x32xf32>, vector<32x128xf32>, vector<16x128xf32> -> vector<16x128xf32>
    %c0_3 = arith.constant 0 : index
    %c0_4 = arith.constant 0 : index
    %3 = vector.load %arg3[%c0_3, %c0_4] : memref<1x128xf32, #tpu.memory_space<vmem>>, vector<1x128xf32>
    %4 = vector.broadcast %3 : vector<1x128xf32> to vector<16x128xf32>
    %5 = arith.addf %2, %4 : vector<16x128xf32>
    %cst_5 = arith.constant 0.000000e+00 : f32
    %6 = vector.broadcast %cst_5 : f32 to vector<16x128xf32>
    %7 = arith.maximumf %5, %6 : vector<16x128xf32>
    %c0_6 = arith.constant 0 : index
    %c0_7 = arith.constant 0 : index
    %8 = vector.load %arg4[%c0_6, %c0_7] : memref<128x128xf32, #tpu.memory_space<vmem>>, vector<128x128xf32>
    %cst_8 = arith.constant dense<0.000000e+00> : vector<16x128xf32>
    %9 = tpu.matmul %7, %8, %cst_8 {dimension_numbers = #tpu.dot_dimension_numbers<[1], [0], [0], [1], [0, 0, 1, 1], [], []>, precision = #tpu.contract_precision<fp32>} : vector<16x128xf32>, vector<128x128xf32>, vector<16x128xf32> -> vector<16x128xf32>
    %c0_9 = arith.constant 0 : index
    %c0_10 = arith.constant 0 : index
    %10 = vector.load %arg5[%c0_9, %c0_10] : memref<1x128xf32, #tpu.memory_space<vmem>>, vector<1x128xf32>
    %11 = vector.broadcast %10 : vector<1x128xf32> to vector<16x128xf32>
    %12 = arith.addf %9, %11 : vector<16x128xf32>
    %cst_11 = arith.constant 0.000000e+00 : f32
    %13 = vector.broadcast %cst_11 : f32 to vector<16x128xf32>
    %14 = arith.maximumf %12, %13 : vector<16x128xf32>
    %c0_12 = arith.constant 0 : index
    %c0_13 = arith.constant 0 : index
    %15 = vector.load %arg6[%c0_12, %c0_13] : memref<128x128xf32, #tpu.memory_space<vmem>>, vector<128x128xf32>
    %cst_14 = arith.constant dense<0.000000e+00> : vector<16x128xf32>
    %16 = tpu.matmul %14, %15, %cst_14 {dimension_numbers = #tpu.dot_dimension_numbers<[1], [0], [0], [1], [0, 0, 1, 1], [], []>, precision = #tpu.contract_precision<fp32>} : vector<16x128xf32>, vector<128x128xf32>, vector<16x128xf32> -> vector<16x128xf32>
    %c0_15 = arith.constant 0 : index
    %c0_16 = arith.constant 0 : index
    %17 = vector.load %arg7[%c0_15, %c0_16] : memref<1x128xf32, #tpu.memory_space<vmem>>, vector<1x128xf32>
    %18 = vector.broadcast %17 : vector<1x128xf32> to vector<16x128xf32>
    %19 = arith.addf %16, %18 : vector<16x128xf32>
    %20 = vector.extract_strided_slice %19 {offsets = [0, 0], sizes = [16, 8], strides = [1, 1]} : vector<16x128xf32> to vector<16x8xf32>
    %21 = arith.negf %20 : vector<16x8xf32>
    %22 = math.exp %21 : vector<16x8xf32>
    %cst_17 = arith.constant 1.000000e+00 : f32
    %23 = vector.broadcast %cst_17 : f32 to vector<16x8xf32>
    %24 = arith.addf %23, %22 : vector<16x8xf32>
    %25 = arith.divf %23, %24 : vector<16x8xf32>
    %c0_18 = arith.constant 0 : index
    %c0_19 = arith.constant 0 : index
    %26 = vector.load %arg8[%c0_18, %c0_19] : memref<16x8xf32, #tpu.memory_space<vmem>>, vector<16x8xf32>
    tpu.vector_store %arg8[%c0_18, %c0_19], %25 {strides = array<i32>} : memref<16x8xf32, #tpu.memory_space<vmem>>, vector<16x8xf32>,
    return
  }
  func.func @transform_0(%arg0: i32) -> (i32, i32) {
    %c0_i32 = arith.constant 0 : i32
    %c0_i32_0 = arith.constant 0 : i32
    return %arg0, %c0_i32 : i32, i32
  }
  func.func @transform_1(%arg0: i32) -> (i32, i32) {
    %c0_i32 = arith.constant 0 : i32
    %c0_i32_0 = arith.constant 0 : i32
    %c0_i32_1 = arith.constant 0 : i32
    return %c0_i32, %c0_i32_0 : i32, i32
  }
  func.func @transform_2(%arg0: i32) -> (i32, i32) {
    %c0_i32 = arith.constant 0 : i32
    %c0_i32_0 = arith.constant 0 : i32
    %c0_i32_1 = arith.constant 0 : i32
    return %c0_i32, %c0_i32_0 : i32, i32
  }
  func.func @transform_3(%arg0: i32) -> (i32, i32) {
    %c0_i32 = arith.constant 0 : i32
    %c0_i32_0 = arith.constant 0 : i32
    %c0_i32_1 = arith.constant 0 : i32
    return %c0_i32, %c0_i32_0 : i32, i32
  }
  func.func @transform_4(%arg0: i32) -> (i32, i32) {
    %c0_i32 = arith.constant 0 : i32
    %c0_i32_0 = arith.constant 0 : i32
    %c0_i32_1 = arith.constant 0 : i32
    return %c0_i32, %c0_i32_0 : i32, i32
  }
  func.func @transform_5(%arg0: i32) -> (i32, i32) {
    %c0_i32 = arith.constant 0 : i32
    %c0_i32_0 = arith.constant 0 : i32
    %c0_i32_1 = arith.constant 0 : i32
    return %c0_i32, %c0_i32_0 : i32, i32
  }
  func.func @transform_6(%arg0: i32) -> (i32, i32) {
    %c0_i32 = arith.constant 0 : i32
    %c0_i32_0 = arith.constant 0 : i32
    %c0_i32_1 = arith.constant 0 : i32
    return %c0_i32, %c0_i32_0 : i32, i32
  }
  func.func @transform_7(%arg0: i32) -> (i32, i32) {
    %c0_i32 = arith.constant 0 : i32
    %c0_i32_0 = arith.constant 0 : i32
    return %arg0, %c0_i32 : i32, i32
  }
}

</mosaic_0001>

<bundles_post_ra>
// kernel: actor_forward.1
= control target key start
LH: loop header
LB: loop body
LE: loop exit
PB: predicated region body
PF: predicated region fallthrough
CT: control target
= control target key end

     0   :  { %12 = vsyncpa [#allocation3], 0  ;;  %s3771_s0 = inlined_call_operand.vmem [shape: f32[16,32], index: 0, kind: input, shape index: {}]   ;;  %s3772_s1 = inlined_call_operand.vmem [shape: f32[32,128], index: 1, kind: input, shape index: {}]   ;;  %s3773_s2 = inlined_call_operand.hbm [shape: f32[1,128], index: 2, kind: input, shape index: {}]   ;;  %s3774_s3 = inlined_call_operand.hbm [shape: f32[128,128], index: 3, kind: input, shape index: {}]   ;;  %s3775_s4 = inlined_call_operand.hbm [shape: f32[1,128], index: 4, kind: input, shape index: {}]   ;;  %s3776_s5 = inlined_call_operand.hbm [shape: f32[128,128], index: 5, kind: input, shape index: {}]   ;;  %s3777_s6 = inlined_call_operand.hbm [shape: f32[1,128], index: 6, kind: input, shape index: {}]   ;;  %s3778_s7 = inlined_call_operand.vmem [shape: f32[16,8], index: 7, kind: output, shape index: {}]  }
   0x1   :  { %13 = vsyncpa [#allocation5], 0 }
   0x2   :  { %14 = vsyncpa [#allocation8], 0  ;;  %s2940_s24 = smov [#allocation4]  }
   0x3   :  { %s34_s25 = sshll.u32 %s2940_s24, 4  ;;  %s35_s25 = int_to_ptr.vmem [resolvable:$true] %s34_s25 }
   0x4   :  { %s2842_s26 = scalar_lea.vmem %s35_s25, 2048  ;;  %p2847_p1 = scmp.lt.s32.totalorder %s35_s25, %s35_s25 }
   0x5   :  { %p2843_p0 = scmp.ne.s32.totalorder %s35_s25, %s2842_s26  ;;  %p2848_p2 = scmp.lt.s32.totalorder %s2842_s26, %s2842_s26 }
   0x7   :  { %p2849_p3 = por %p2848_p2, %p2847_p1 }
   0x9   :  { %p2850_p4 = pnand %p2849_p3, %p2843_p0 }
   0xb   :  { %2853 = shalt.err (!%p2850_p4)
}
   0xc   :  { %s2941_s27 = smov 128   ;;  %s2942_s28 = smov 8  }
   0xd   :  { %40 = dma.hbm_to_vmem [thread:$0]  %s3774_s3, 2048, %s35_s25, [#allocation5], %s2941_s27, %s2941_s27, %s2942_s28  }
   0xe   :  { %s2943_s8 = smov [#allocation7]   ;;  %s2944_s10 = smov [#allocation2]  }
   0xf   :  { %s56_s9 = sshll.u32 %s2943_s8, 4  ;;  %s25_s11 = sshll.u32 %s2944_s10, 4  ;;  %s57_s9 = int_to_ptr.vmem [resolvable:$true] %s56_s9  ;;  %s26_s11 = int_to_ptr.vmem [resolvable:$true] %s25_s11 }
  0x10   :  { %s2862_s12 = scalar_lea.vmem %s57_s9, 2048  ;;  %p2867_p6 = scmp.lt.s32.totalorder %s57_s9, %s57_s9 }
  0x11   :  { %p2863_p5 = scmp.ne.s32.totalorder %s57_s9, %s2862_s12  ;;  %p2868_p7 = scmp.lt.s32.totalorder %s2862_s12, %s2862_s12 }
  0x13   :  { %p2869_p8 = por %p2868_p7, %p2867_p6 }
  0x15   :  { %p2870_p9 = pnand %p2869_p8, %p2863_p5 }
  0x17   :  { %2873 = shalt.err (!%p2870_p9)
}
  0x18   :  { %62 = dma.hbm_to_vmem [thread:$0]  %s3776_s5, 2048, %s57_s9, [#allocation8], %s2941_s27, %s2941_s27, %s2942_s28  }
  0x19   :  { %s2882_s15 = scalar_lea.vmem %s26_s11, 16  ;;  %s2886_s3 = scalar_lea.vmem %s26_s11, 32 }
  0x1a   :  { %p2883_p10 = scmp.ne.s32.totalorder %s26_s11, %s2882_s15  ;;  %p2887_p11 = scmp.lt.s32.totalorder %s26_s11, %s26_s11 }
  0x1b   :  { %p2888_p12 = scmp.lt.s32.totalorder %s2886_s3, %s2882_s15 }
  0x1d   :  { %p2889_p13 = por %p2888_p12, %p2887_p11 }
  0x1f   :  { %p2890_p0 = pnand %p2889_p13, %p2883_p10 }
  0x21   :  { %2893 = shalt.err (!%p2890_p0)
}
  0x22   :  { %28 = dma.hbm_to_vmem [thread:$0]  %s3773_s2, 16, %s26_s11, [#allocation3]  }
  0x23   :  { %s2945_s18 = smov [#allocation6]   ;;  %s2946_s20 = smov [#allocation9]  }
  0x24   :  { %s47_s19 = sshll.u32 %s2945_s18, 4  ;;  %s69_s21 = sshll.u32 %s2946_s20, 4  ;;  %s48_s19 = int_to_ptr.vmem [resolvable:$true] %s47_s19  ;;  %s70_s21 = int_to_ptr.vmem [resolvable:$true] %s69_s21 }
  0x25   :  { %s2902_s22 = scalar_lea.vmem %s48_s19, 16  ;;  %s2906_s5 = scalar_lea.vmem %s48_s19, 32 }
  0x26   :  { %p2903_p1 = scmp.ne.s32.totalorder %s48_s19, %s2902_s22  ;;  %p2907_p2 = scmp.lt.s32.totalorder %s48_s19, %s48_s19 }
  0x27   :  { %p2908_p3 = scmp.lt.s32.totalorder %s2906_s5, %s2902_s22 }
  0x29   :  { %p2909_p4 = por %p2908_p3, %p2907_p2 }
  0x2b   :  { %p2910_p5 = pnand %p2909_p4, %p2903_p1 }
  0x2d   :  { %2913 = shalt.err (!%p2910_p5)
}
  0x2e   :  { %50 = dma.hbm_to_vmem [thread:$0]  %s3775_s4, 16, %s48_s19, [#allocation5]  }
  0x2f   :  { %s2922_s25 = scalar_lea.vmem %s70_s21, 16  ;;  %s2926_s2 = scalar_lea.vmem %s70_s21, 32 }
  0x30   :  { %p2923_p6 = scmp.ne.s32.totalorder %s70_s21, %s2922_s25  ;;  %p2927_p7 = scmp.lt.s32.totalorder %s70_s21, %s70_s21 }
  0x31   :  { %p2928_p8 = scmp.lt.s32.totalorder %s2926_s2, %s2922_s25 }
  0x33   :  { %p2929_p9 = por %p2928_p8, %p2927_p7 }
  0x35   :  { %p2930_p10 = pnand %p2929_p9, %p2923_p6 }
  0x37   :  { %2933 = shalt.err (!%p2930_p10)
}
  0x38   :  { %72 = dma.hbm_to_vmem [thread:$0]  %s3777_s6, 16, %s70_s21, [#allocation8]  }
  0x39   :  { %2934 = dma.done.wait [#allocation3], 16  }
  0x3a   :  { %2935 = vsyncadd [#allocation3], 4294967280 }
  0x3b   :  { %2936 = dma.done.wait [#allocation5], 2064  }
  0x3c   :  { %2937 = vsyncadd [#allocation5], 4294965232 }
  0x3d   :  { %2938 = dma.done.wait [#allocation8], 2064  }
  0x3e   :  { %2939 = vsyncadd [#allocation8], 4294965232  ;;  %vm101_vm0 = vcmask 261120   ;;  %v93_v0 = vld [vmem:[%s3772_s1 + $0x18] sm:$0xff]  ;;  %v92_v1 = vld [vmem:[%s3772_s1 + $0x10] sm:$0xff]  ;;  %vm2066_vm1 = vcmask 64512  }
  0x3f   :  { %v91_v2 = vld [vmem:[%s3772_s1 + $0x8] sm:$0xff]  ;;  %v3011_v3 = vand.u32 4294901760, %v93_v0  ;;  %v3013_v4 = vand.u32 4294901760, %v92_v1  ;;  %v90_v6 = vld [vmem:[%s3772_s1] sm:$0xff]  ;;  %v652_v39 = vld [vmem:[#allocation4 + $0x70] sm:$0xff] }
  0x40   :  { %v3015_v5 = vand.u32 4294901760, %v91_v2  ;;  %v88_v7 = vld [vmem:[%s3771_s0] sm:$0xff]  ;;  %v89_v8 = vld [vmem:[%s3771_s0 + $0x8] sm:$0xff]  ;;  %v3026_v9 = vand.u32 4294901760, %v90_v6  ;;  %v3063_v41 = vand.u32 4294901760, %v652_v39  ;;  %v648_v59 = vld [vmem:[#allocation4 + $0x50] sm:$0xff] }
  0x41   :  { %v103_v10 = vsel %vm101_vm0, %v88_v7, 0  ;;  %v106_v11 = vsel %vm101_vm0, %v89_v8, 0  ;;  %2333 = vmatprep.subr.mxu0 %v3011_v3  ;;  %v223_v12 = vsub.f32 %v93_v0, %v3011_v3  ;;  %v230_v15 = vsub.f32 %v92_v1, %v3013_v4  ;;  %v653_v38 = vld [vmem:[#allocation4 + $0x78] sm:$0xff]  ;;  %v651_v50 = vld [vmem:[#allocation4 + $0x68] sm:$0xff]  ;;  %v650_v52 = vld [vmem:[#allocation4 + $0x60] sm:$0xff] }
  0x42   :  { %v3030_v13 = vand.u32 4294901760, %v103_v10  ;;  %v3032_v14 = vand.u32 4294901760, %v106_v11  ;;  %2334 = vmatpush3.msra.mxu0 %v3011_v3  ;;  %v237_v16 = vsub.f32 %v91_v2, %v3015_v5  ;;  %v244_v17 = vsub.f32 %v90_v6, %v3026_v9  ;;  %v649_v55 = vld [vmem:[#allocation4 + $0x58] sm:$0xff]  ;;  %v647_v0 = vld [vmem:[#allocation4 + $0x48] sm:$0xff]  ;;  %v646_v6 = vld [vmem:[#allocation4 + $0x40] sm:$0xff] }
  0x43   :  { %2335 = vmatprep.subr.mxu0 %v3013_v4  ;;  %v224_v18 = vand.u32 4294901760, %v223_v12  ;;  %v231_v20 = vand.u32 4294901760, %v230_v15  ;;  %v3059_v40 = vand.u32 4294901760, %v653_v38  ;;  %v3074_v43 = vsub.f32 %v652_v39, %v3063_v41 }
  0x44   :  { %v3040_v19 = vsub.f32 %v103_v10, %v3030_v13  ;;  %v3043_v21 = vsub.f32 %v106_v11, %v3032_v14  ;;  %2352 = vmatprep.mubr.f32.mxu1 %v3030_v13  ;;  %2336 = vmatpush3.msra.mxu0 %v3013_v4  ;;  %v238_v22 = vand.u32 4294901760, %v237_v16  ;;  %v3047_v23 = vand.u32 4294901760, %v244_v17 }
  0x45   :  { %2337 = vmatprep.subr.mxu0 %v3015_v5  ;;  %v225_v24 = vsub.f32 %v223_v12, %v224_v18  ;;  %v232_v26 = vsub.f32 %v230_v15, %v231_v20  ;;  %v3069_v42 = vsub.f32 %v653_v38, %v3059_v40  ;;  %v3083_v45 = vand.u32 4294901760, %v3074_v43 }
  0x46   :  { %v179_v25 = vand.u32 4294901760, %v3040_v19  ;;  %v189_v27 = vand.u32 4294901760, %v3043_v21  ;;  %2338 = vmatpush3.msra.mxu0 %v3015_v5  ;;  %v239_v28 = vsub.f32 %v237_v16, %v238_v22  ;;  %v246_v29 = vsub.f32 %v244_v17, %v3047_v23 }
  0x47   :  { %2339 = vmatprep.subr.mxu0 %v3026_v9  ;;  %v226_v30 = vand.u32 4294901760, %v225_v24  ;;  %v233_v32 = vand.u32 4294901760, %v232_v26  ;;  %v3079_v44 = vand.u32 4294901760, %v3069_v42  ;;  %v773_v47 = vsub.f32 %v3074_v43, %v3083_v45  ;;  %v643_v24 = vld [vmem:[#allocation4 + $0x28] sm:$0xff] }
  0x48   :  { %v180_v31 = vsub.f32 %v3040_v19, %v179_v25  ;;  %v190_v33 = vsub.f32 %v3043_v21, %v189_v27  ;;  %2340 = vmatpush3.msra.mxu0 %v3026_v9  ;;  %v240_v36 = vand.u32 4294901760, %v239_v28  ;;  %v247_v37 = vand.u32 4294901760, %v246_v29 }
  0x49   :  { %2344 = vmatprep.subr.mxu1 %v226_v30  ;;  %2355 = vmatprep.subr.mxu0 %v223_v12  ;;  %v766_v46 = vsub.f32 %v3069_v42, %v3079_v44  ;;  %v774_v49 = vand.u32 4294901760, %v773_v47  ;;  %v3107_v51 = vand.u32 4294901760, %v651_v50  ;;  %v3112_v54 = vand.u32 4294901760, %v650_v52 }
  0x4a   :  { %v181_v34 = vand.u32 4294901760, %v180_v31  ;;  %v191_v35 = vand.u32 4294901760, %v190_v33  ;;  %2345 = vmatpush3.msra.mxu1 %v226_v30  ;;  %v3122_v58 = vand.u32 4294901760, %v649_v55  ;;  %v3134_v63 = vand.u32 4294901760, %v648_v59  ;;  %v642_v30 = vld [vmem:[#allocation4 + $0x20] sm:$0xff] }
  0x4b   :  { %2346 = vmatprep.subr.mxu1 %v233_v32  ;;  %v767_v48 = vand.u32 4294901760, %v766_v46  ;;  %v3110_v53 = vsub.f32 %v651_v50, %v3107_v51  ;;  %v3120_v57 = vsub.f32 %v650_v52, %v3112_v54  ;;  %v3155_v10 = vand.u32 4294901760, %v646_v6 }
  0x4c   :  { %2341 = vmatprep.mubr.f32.mxu0 %v181_v34  ;;  %2347 = vmatpush3.msra.mxu1 %v233_v32  ;;  %v3132_v62 = vsub.f32 %v649_v55, %v3122_v58  ;;  %v3193_v28 = vand.u32 4294901760, %v643_v24 }
  0x4d   :  { %2342 = vmatmul.mubr.f32.vlgmr.msra.gmra.mxu0 %v191_v35  ;;  %2348 = vmatprep.subr.mxu1 %v240_v36  ;;  %v3117_v56 = vand.u32 4294901760, %v3110_v53  ;;  %v3129_v61 = vand.u32 4294901760, %v3120_v57  ;;  %v3206_v35 = vand.u32 4294901760, %v642_v30 }
  0x4e   :  { %2356 = vmatpush3.msra.mxu0 %v223_v12  ;;  %2349 = vmatpush3.msra.mxu1 %v240_v36  ;;  %v645_v12 = vld [vmem:[#allocation4 + $0x38] sm:$0xff]  ;;  %v3203_v34 = vsub.f32 %v643_v24, %v3193_v28 }
  0x4f   :  { %2357 = vmatprep.subr.mxu0 %v230_v15  ;;  %2350 = vmatprep.subr.mxu1 %v247_v37  ;;  %v780_v60 = vsub.f32 %v3110_v53, %v3117_v56  ;;  %v787_v2 = vsub.f32 %v3120_v57, %v3129_v61  ;;  %v641_v36 = vld [vmem:[#allocation4 + $0x18] sm:$0xff]  ;;  %v3218_v47 = vsub.f32 %v642_v30, %v3206_v35 }
  0x50   :  { %2358 = vmatpush3.msra.mxu0 %v230_v15  ;;  %2351 = vmatpush3.msra.mxu1 %v247_v37  ;;  %v3164_v15 = vsub.f32 %v646_v6, %v3155_v10  ;;  %v3212_v39 = vand.u32 4294901760, %v3203_v34  ;;  %v3214_v46 = vand.u32 4294901760, %v641_v36 }
  0x51   :  { %2359 = vmatprep.subr.mxu0 %v237_v16  ;;  %2353 = vmatmul.mubr.f32.vlgmr.msra.gmra.mxu1 %v3032_v14  ;;  %v781_v1 = vand.u32 4294901760, %v780_v60  ;;  %v788_v7 = vand.u32 4294901760, %v787_v2  ;;  %v639_v60 = vld [vmem:[#allocation4 + $0x8] sm:$0xff] }
  0x52   :  { %2360 = vmatpush3.msra.mxu0 %v237_v16  ;;  %2366 = vmatprep.subr.mxu1 %v3011_v3  ;;  %v3166_v16 = vand.u32 4294901760, %v645_v12  ;;  %3815 = vst [vmem:[#allocation15_spill] sm:$0xff] %v3212_v39  ;;  %v836_v50 = vsub.f32 %v3203_v34, %v3212_v39  ;;  %v3224_v52 = vsub.f32 %v641_v36, %v3214_v46  ;;  %v3239_v6 = vand.u32 4294901760, %v639_v60 }
  0x53   :  { %2361 = vmatprep.subr.mxu0 %v244_v17  ;;  %2363 = vmatprep.mubr.f32.mxu0 %v3040_v19 }
  0x54   :  { %2362 = vmatpush3.msra.mxu0 %v244_v17  ;;  %2367 = vmatpush3.msra.mxu1 %v3011_v3 }
  0x55   :  { %2364 = vmatmul.mubr.f32.vlgmr.msra.gmra.mxu0 %v3043_v21  ;;  %2368 = vmatprep.subr.mxu1 %v3013_v4  ;;  %v3177_v21 = vsub.f32 %v645_v12, %v3166_v16 }
  0x56   :  { %2377 = vmatprep.subr.mxu0 %v224_v18  ;;  %2369 = vmatpush3.msra.mxu1 %v3013_v4 }
  0x57   :  { %2378 = vmatpush3.msra.mxu0 %v224_v18  ;;  %2370 = vmatprep.subr.mxu1 %v3015_v5  ;;  %v644_v18 = vld [vmem:[#allocation4 + $0x30] sm:$0xff]  ;;  %v3188_v26 = vand.u32 4294901760, %v3177_v21 }
  0x58   :  { %2379 = vmatprep.subr.mxu0 %v231_v20  ;;  %2371 = vmatpush3.msra.mxu1 %v3015_v5 }
  0x59   :  { %2380 = vmatpush3.msra.mxu0 %v231_v20  ;;  %2372 = vmatprep.subr.mxu1 %v3026_v9  ;;  %v3174_v20 = vand.u32 4294901760, %v3164_v15  ;;  %3813 = vst [vmem:[#allocation13_spill] sm:$0xff] %v3188_v26  ;;  %v822_v32 = vsub.f32 %v3177_v21, %v3188_v26 }
  0x5a   :  { %2381 = vmatprep.subr.mxu0 %v238_v22  ;;  %2373 = vmatpush3.msra.mxu1 %v3026_v9 }
  0x5b   :  { %2374 = vmatprep.mubr.f32.mxu1 %v179_v25  ;;  %2382 = vmatpush3.msra.mxu0 %v238_v22  ;;  %v3179_v22 = vand.u32 4294901760, %v644_v18  ;;  %v815_v25 = vsub.f32 %v3164_v15, %v3174_v20  ;;  %v823_v37 = vand.u32 4294901760, %v822_v32 }
  0x5c   :  { %2375 = vmatmul.mubr.f32.vlgmr.msra.gmra.mxu1 %v189_v27  ;;  %2383 = vmatprep.subr.mxu0 %v3047_v23 }
  0x5d   :  { %2388 = vmatprep.subr.mxu1 %v3011_v3  ;;  %2384 = vmatpush3.msra.mxu0 %v3047_v23  ;;  %v3191_v27 = vsub.f32 %v644_v18, %v3179_v22  ;;  %v816_v31 = vand.u32 4294901760, %v815_v25 }
  0x5e   :  { %2385 = vmatprep.mubr.f32.mxu0 %v3030_v13  ;;  %2389 = vmatpush3.msra.mxu1 %v3011_v3  ;;  %v3141_v3 = vand.u32 4294901760, %v3132_v62 }
  0x5f   :  { %2386 = vmatmul.mubr.f32.vlgmr.msra.gmra.mxu0 %v3032_v14  ;;  %2390 = vmatprep.subr.mxu1 %v3013_v4  ;;  %v3200_v33 = vand.u32 4294901760, %v3191_v27 }
  0x60   :  { %2396 = vmatprep.mubr.f32.mxu1 %v3030_v13  ;;  %2391 = vmatpush3.msra.mxu1 %v3013_v4  ;;  %v3144_v4 = vsub.f32 %v648_v59, %v3134_v63  ;;  %v794_v8 = vsub.f32 %v3132_v62, %v3141_v3  ;;  %v3230_v59 = vand.u32 4294901760, %v3218_v47 }
  0x61   :  { %2399 = vmatprep.subr.mxu0 %v3059_v40  ;;  %2392 = vmatprep.subr.mxu1 %v3015_v5  ;;  %3814 = vst [vmem:[#allocation14_spill] sm:$0xff] %v3200_v33  ;;  %v829_v38 = vsub.f32 %v3191_v27, %v3200_v33 }
  0x62   :  { %2400 = vmatpush3.msra.mxu0 %v3059_v40  ;;  %2393 = vmatpush3.msra.mxu1 %v3015_v5  ;;  %v3147_v5 = vand.u32 4294901760, %v647_v0  ;;  %v795_v13 = vand.u32 4294901760, %v794_v8  ;;  %3816 = vst [vmem:[#allocation16_spill] sm:$0xff] %v3230_v59  ;;  %v638_v8 = vld [vmem:[#allocation4] sm:$0xff] }
  0x63   :  { %2401 = vmatprep.subr.mxu0 %v3063_v41  ;;  %2394 = vmatprep.subr.mxu1 %v3026_v9  ;;  %v3253_v18 = vand.u32 4294901760, %v638_v8 }
  0x64   :  { %2402 = vmatpush3.msra.mxu0 %v3063_v41  ;;  %2395 = vmatpush3.msra.mxu1 %v3026_v9  ;;  %v3153_v9 = vand.u32 4294901760, %v3144_v4  ;;  %v3158_v11 = vsub.f32 %v647_v0, %v3147_v5  ;;  %v837_v0 = vand.u32 4294901760, %v836_v50 }
  0x65   :  { %2397 = vmatmul.mubr.f32.vlgmr.msra.gmra.mxu1 %v3032_v14  ;;  %2434 = vmatprep.subr.mxu1 %v767_v48 }
  0x66   :  { %2435 = vmatpush3.msra.mxu1 %v767_v48  ;;  %2403 = vmatprep.subr.mxu0 %v3107_v51  ;;  %v801_v14 = vsub.f32 %v3144_v4, %v3153_v9  ;;  %v3170_v17 = vand.u32 4294901760, %v3158_v11  ;;  %v640_v48 = vld [vmem:[#allocation4 + $0x10] sm:$0xff] }
  0x67   :  { %2436 = vmatprep.subr.mxu1 %v774_v49  ;;  %2404 = vmatpush3.msra.mxu0 %v3107_v51  ;;  %v3226_v55 = vand.u32 4294901760, %v640_v48 }
  0x68   :  { %2437 = vmatpush3.msra.mxu1 %v774_v49  ;;  %2405 = vmatprep.subr.mxu0 %v3112_v54  ;;  %v802_v19 = vand.u32 4294901760, %v801_v14  ;;  %v808_v23 = vsub.f32 %v3158_v11, %v3170_v17  ;;  %v830_v49 = vand.u32 4294901760, %v829_v38  ;;  %v3251_v14 = vsub.f32 %v639_v60, %v3239_v6 }
  0x69   :  { %2406 = vmatpush3.msra.mxu0 %v3112_v54  ;;  %2438 = vmatprep.subr.mxu1 %v781_v1  ;;  %v3237_v2 = vsub.f32 %v640_v48, %v3226_v55 }
  0x6a   :  { %2407 = vmatprep.subr.mxu0 %v3122_v58  ;;  %2439 = vmatpush3.msra.mxu1 %v781_v1  ;;  %v809_v29 = vand.u32 4294901760, %v808_v23  ;;  %v3234_v1 = vand.u32 4294901760, %v3224_v52  ;;  %v3260_v25 = vand.u32 4294901760, %v3251_v14 }
  0x6b   :  { %2408 = vmatpush3.msra.mxu0 %v3122_v58  ;;  %2440 = vmatprep.subr.mxu1 %v788_v7 }
  0x6c   :  { %2409 = vmatprep.subr.mxu0 %v3134_v63  ;;  %2441 = vmatpush3.msra.mxu1 %v788_v7  ;;  %3817 = vst [vmem:[#allocation17_spill] sm:$0xff] %v3234_v1  ;;  %v843_v7 = vsub.f32 %v3218_v47, %v3230_v59  ;;  %v850_v12 = vsub.f32 %v3224_v52, %v3234_v1  ;;  %3819 = vst [vmem:[#allocation19_spill] sm:$0xff] %v3260_v25 }
  0x6d   :  { %2410 = vmatpush3.msra.mxu0 %v3134_v63  ;;  %2442 = vmatprep.subr.mxu1 %v795_v13 }
  0x6e   :  { %2411 = vmatprep.subr.mxu0 %v3147_v5  ;;  %2443 = vmatpush3.msra.mxu1 %v795_v13  ;;  %v3248_v13 = vand.u32 4294901760, %v3237_v2  ;;  %v851_v23 = vand.u32 4294901760, %v850_v12 }
  0x6f   :  { %2412 = vmatpush3.msra.mxu0 %v3147_v5  ;;  %2444 = vmatprep.subr.mxu1 %v802_v19 }
  0x70   :  { %2413 = vmatprep.subr.mxu0 %v3155_v10  ;;  %2445 = vmatpush3.msra.mxu1 %v802_v19  ;;  %3818 = vst [vmem:[#allocation18_spill] sm:$0xff] %v3248_v13  ;;  %v844_v19 = vand.u32 4294901760, %v843_v7  ;;  %v857_v24 = vsub.f32 %v3237_v2, %v3248_v13 }
  0x71   :  { %2414 = vmatpush3.msra.mxu0 %v3155_v10  ;;  %2446 = vmatprep.subr.mxu1 %v809_v29 }
  0x72   :  { %2415 = vmatprep.subr.mxu0 %v3166_v16  ;;  %2447 = vmatpush3.msra.mxu1 %v809_v29  ;;  %v3263_v29 = vsub.f32 %v638_v8, %v3253_v18  ;;  %v858_v30 = vand.u32 4294901760, %v857_v24 }
  0x73   :  { %2416 = vmatpush3.msra.mxu0 %v3166_v16  ;;  %2448 = vmatprep.subr.mxu1 %v816_v31 }
  0x74   :  { %2417 = vmatprep.subr.mxu0 %v3179_v22  ;;  %2449 = vmatpush3.msra.mxu1 %v816_v31  ;;  %v864_v31 = vsub.f32 %v3251_v14, %v3260_v25  ;;  %v3270_v32 = vand.u32 4294901760, %v3263_v29 }
  0x75   :  { %2418 = vmatpush3.msra.mxu0 %v3179_v22  ;;  %2450 = vmatprep.subr.mxu1 %v823_v37 }
  0x76   :  { %2419 = vmatprep.subr.mxu0 %v3193_v28  ;;  %2451 = vmatpush3.msra.mxu1 %v823_v37  ;;  %3820 = vst [vmem:[#allocation20_spill] sm:$0xff] %v3270_v32  ;;  %v865_v36 = vand.u32 4294901760, %v864_v31  ;;  %v871_v37 = vsub.f32 %v3263_v29, %v3270_v32 }
  0x77   :  { %2420 = vmatpush3.msra.mxu0 %v3193_v28  ;;  %2452 = vmatprep.subr.mxu1 %v830_v49 }
  0x78   :  { %2421 = vmatprep.subr.mxu0 %v3206_v35  ;;  %2453 = vmatpush3.msra.mxu1 %v830_v49  ;;  %v872_v38 = vand.u32 4294901760, %v871_v37  ;;  %v2076_v49 = vld [vmem:[#allocation2] ss:$0 sm:$0xff] }
  0x79   :  { %2422 = vmatpush3.msra.mxu0 %v3206_v35  ;;  %2454 = vmatprep.subr.mxu1 %v837_v0 }
  0x7a   :  { %2423 = vmatprep.subr.mxu0 %v3214_v46  ;;  %2455 = vmatpush3.msra.mxu1 %v837_v0 }
  0x7b   :  { %2424 = vmatpush3.msra.mxu0 %v3214_v46  ;;  %2456 = vmatprep.subr.mxu1 %v844_v19 }
  0x7c   :  { %2425 = vmatprep.subr.mxu0 %v3226_v55  ;;  %2457 = vmatpush3.msra.mxu1 %v844_v19 }
  0x7d   :  { %2426 = vmatpush3.msra.mxu0 %v3226_v55  ;;  %2458 = vmatprep.subr.mxu1 %v851_v23 }
  0x7e   :  { %2427 = vmatprep.subr.mxu0 %v3239_v6  ;;  %2459 = vmatpush3.msra.mxu1 %v851_v23 }
  0x7f   :  { %2428 = vmatpush3.msra.mxu0 %v3239_v6  ;;  %2460 = vmatprep.subr.mxu1 %v858_v30 }
  0x80   :  { %2429 = vmatprep.subr.mxu0 %v3253_v18  ;;  %2461 = vmatpush3.msra.mxu1 %v858_v30 }
  0x81   :  { %2430 = vmatpush3.msra.mxu0 %v3253_v18  ;;  %2462 = vmatprep.subr.mxu1 %v865_v36 }
  0x82   :  { %2469 = vmatprep.subr.mxu0 %v3069_v42  ;;  %2463 = vmatpush3.msra.mxu1 %v865_v36 }
  0x83   :  { %2464 = vmatprep.subr.mxu1 %v872_v38 }
  0x84   :  { %2465 = vmatpush3.msra.mxu1 %v872_v38 }
  0x85   :  { %2504 = vmatprep.subr.mxu1 %v3059_v40 }
 0x10d   :  { %v2343_v48 = vpop.f32.mrf.mxu0 }
 0x10e   :  { %v194_v0 = vadd.f32 %v2343_v48, %v2076_v49 }
 0x10f   :  { %v183_v50 = vpop.f32.mrf.mxu0 }
 0x110   :  { %v184_v7 = vadd.f32 %v2076_v49, %v183_v50 }
 0x111   :  { %v2354_v60 = vpop.f32.mrf.mxu1 }
 0x112   :  { %v291_v19 = vadd.f32 %v2354_v60, %v194_v0 }
 0x113   :  { %v284_v8 = vpop.f32.mrf.mxu1 }
 0x114   :  { %v285_v24 = vadd.f32 %v284_v8, %v184_v7 }
 0x115   :  { %v2365_v12 = vpop.f32.mrf.mxu0 }
 0x116   :  { %v378_v30 = vadd.f32 %v2365_v12, %v291_v19 }
 0x117   :  { %v370_v31 = vpop.f32.mrf.mxu0 }
 0x118   :  { %v371_v36 = vadd.f32 %v370_v31, %v285_v24  ;;  %v1355_v31 = vld [vmem:[#allocation7 + $0x40] sm:$0xff] }
 0x11c   :  { %v2376_v23 = vpop.f32.mrf.mxu1 }
 0x11d   :  { %v463_v25 = vadd.f32 %v2376_v23, %v378_v30 }
 0x11e   :  { %v454_v37 = vpop.f32.mrf.mxu1 }
 0x11f   :  { %v2387_v32 = vpop.f32.mrf.mxu0  ;;  %v455_v38 = vadd.f32 %v454_v37, %v371_v36  ;;  %v3506_v36 = vand.u32 4294901760, %v1355_v31 }
 0x120   :  { %v552_v1 = vadd.f32 %v2387_v32, %v463_v25 }
 0x121   :  { %v545_v13 = vpop.f32.mrf.mxu0 }
 0x122   :  { %v546_v39 = vadd.f32 %v545_v13, %v455_v38  ;;  %v1354_v38 = vld [vmem:[#allocation7 + $0x38] sm:$0xff] }
 0x125   :  { %v2398_v59 = vpop.f32.mrf.mxu1 }
 0x126   :  { %v633_v33 = vadd.f32 %v2398_v59, %v552_v1 }
 0x127   :  { %v626_v26 = vpop.f32.mrf.mxu1 }
 0x128   :  { %v637_v48 = vmax.f32 %v633_v33, 0.0  ;;  %v627_v49 = vadd.f32 %v626_v26, %v546_v39 }
 0x12a   :  { %v3277_v50 = vand.u32 4294901760, %v637_v48  ;;  %v636_v60 = vmax.f32 %v627_v49, 0.0  ;;  %v3511_v49 = vsub.f32 %v1355_v31, %v3506_v36 }
 0x12c   :  { %v3280_v0 = vsub.f32 %v637_v48, %v3277_v50  ;;  %v3282_v7 = vand.u32 4294901760, %v636_v60 }
 0x12e   :  { %v754_v8 = vand.u32 4294901760, %v3280_v0  ;;  %v743_v12 = vsub.f32 %v636_v60, %v3282_v7  ;;  %2466 = vmatprep.mubr.f32.mxu1 %v3282_v7  ;;  %v1353_v60 = vld [vmem:[#allocation7 + $0x30] sm:$0xff] }
 0x12f   :  { %2467 = vmatmul.mubr.f32.vlgmr.msra.gmra.mxu1 %v3277_v50 }
 0x130   :  { %2505 = vmatpush3.msra.mxu1 %v3059_v40  ;;  %v744_v33 = vand.u32 4294901760, %v743_v12  ;;  %v755_v26 = vsub.f32 %v3280_v0, %v754_v8 }
 0x131   :  { %2506 = vmatprep.subr.mxu1 %v3063_v41 }
 0x132   :  { %2507 = vmatpush3.msra.mxu1 %v3063_v41  ;;  %2536 = vmatprep.mubr.f32.mxu1 %v744_v33  ;;  %v745_v39 = vsub.f32 %v743_v12, %v744_v33  ;;  %v756_v1 = vand.u32 4294901760, %v755_v26  ;;  %v1352_v33 = vld [vmem:[#allocation7 + $0x28] sm:$0xff] }
 0x133   :  { %2508 = vmatprep.subr.mxu1 %v3107_v51 }
 0x134   :  { %2509 = vmatpush3.msra.mxu1 %v3107_v51  ;;  %v746_v59 = vand.u32 4294901760, %v745_v39 }
 0x135   :  { %2510 = vmatprep.subr.mxu1 %v3112_v54 }
 0x136   :  { %2511 = vmatpush3.msra.mxu1 %v3112_v54  ;;  %2431 = vmatprep.mubr.f32.mxu0 %v746_v59 }
 0x137   :  { %2512 = vmatprep.subr.mxu1 %v3122_v58  ;;  %2432 = vmatmul.mubr.f32.vlgmr.msra.gmra.mxu0 %v756_v1  ;;  %v3535_v1 = vand.u32 4294901760, %v1352_v33 }
 0x138   :  { %2470 = vmatpush3.msra.mxu0 %v3069_v42  ;;  %2513 = vmatpush3.msra.mxu1 %v3122_v58  ;;  %v3823_v42 = vld [vmem:[#allocation15_spill] sm:$0xff] }
 0x139   :  { %2471 = vmatprep.subr.mxu0 %v3074_v43  ;;  %2501 = vmatprep.mubr.f32.mxu0 %v743_v12  ;;  %v3523_v12 = vand.u32 4294901760, %v1353_v60 }
 0x13a   :  { %2514 = vmatprep.subr.mxu1 %v3134_v63  ;;  %2472 = vmatpush3.msra.mxu0 %v3074_v43  ;;  %v3824_v43 = vld [vmem:[#allocation16_spill] sm:$0xff] }
 0x13b   :  { %2515 = vmatpush3.msra.mxu1 %v3134_v63  ;;  %2473 = vmatprep.subr.mxu0 %v3110_v53  ;;  %v3533_v59 = vsub.f32 %v1353_v60, %v3523_v12 }
 0x13c   :  { %2516 = vmatprep.subr.mxu1 %v3147_v5  ;;  %2474 = vmatpush3.msra.mxu0 %v3110_v53  ;;  %v3828_v53 = vld [vmem:[#allocation20_spill] sm:$0xff] }
 0x13d   :  { %2517 = vmatpush3.msra.mxu1 %v3147_v5  ;;  %2475 = vmatprep.subr.mxu0 %v3120_v57 }
 0x13e   :  { %2518 = vmatprep.subr.mxu1 %v3155_v10  ;;  %2476 = vmatpush3.msra.mxu0 %v3120_v57  ;;  %v1361_v57 = vld [vmem:[#allocation7 + $0x70] sm:$0xff] }
 0x13f   :  { %2519 = vmatpush3.msra.mxu1 %v3155_v10  ;;  %2477 = vmatprep.subr.mxu0 %v3132_v62 }
 0x140   :  { %2520 = vmatprep.subr.mxu1 %v3166_v16  ;;  %2478 = vmatpush3.msra.mxu0 %v3132_v62  ;;  %v3426_v62 = vand.u32 4294901760, %v1361_v57 }
 0x141   :  { %2521 = vmatpush3.msra.mxu1 %v3166_v16  ;;  %2479 = vmatprep.subr.mxu0 %v3144_v4 }
 0x142   :  { %2522 = vmatprep.subr.mxu1 %v3179_v22  ;;  %2480 = vmatpush3.msra.mxu0 %v3144_v4  ;;  %v1358_v4 = vld [vmem:[#allocation7 + $0x58] sm:$0xff] }
 0x143   :  { %2523 = vmatpush3.msra.mxu1 %v3179_v22  ;;  %2481 = vmatprep.subr.mxu0 %v3158_v11 }
 0x144   :  { %2524 = vmatprep.subr.mxu1 %v3193_v28  ;;  %2482 = vmatpush3.msra.mxu0 %v3158_v11  ;;  %v3436_v11 = vand.u32 4294901760, %v1358_v4 }
 0x145   :  { %2525 = vmatpush3.msra.mxu1 %v3193_v28  ;;  %2483 = vmatprep.subr.mxu0 %v3164_v15 }
 0x146   :  { %2526 = vmatprep.subr.mxu1 %v3206_v35  ;;  %2484 = vmatpush3.msra.mxu0 %v3164_v15 }
 0x147   :  { %2527 = vmatpush3.msra.mxu1 %v3206_v35  ;;  %2485 = vmatprep.subr.mxu0 %v3177_v21 }
 0x148   :  { %2528 = vmatprep.subr.mxu1 %v3214_v46  ;;  %2486 = vmatpush3.msra.mxu0 %v3177_v21 }
 0x149   :  { %2529 = vmatpush3.msra.mxu1 %v3214_v46  ;;  %2487 = vmatprep.subr.mxu0 %v3191_v27 }
 0x14a   :  { %2530 = vmatprep.subr.mxu1 %v3226_v55  ;;  %2488 = vmatpush3.msra.mxu0 %v3191_v27  ;;  %v3456_v27 = vsub.f32 %v1358_v4, %v3436_v11  ;;  %v1349_v4 = vld [vmem:[#allocation7 + $0x10] sm:$0xff] }
 0x14b   :  { %2531 = vmatpush3.msra.mxu1 %v3226_v55  ;;  %2489 = vmatprep.subr.mxu0 %v3203_v34 }
 0x14c   :  { %2532 = vmatprep.subr.mxu1 %v3239_v6  ;;  %2490 = vmatpush3.msra.mxu0 %v3203_v34 }
 0x14d   :  { %2533 = vmatpush3.msra.mxu1 %v3239_v6  ;;  %2491 = vmatprep.subr.mxu0 %v3218_v47 }
 0x14e   :  { %2534 = vmatprep.subr.mxu1 %v3253_v18  ;;  %2492 = vmatpush3.msra.mxu0 %v3218_v47 }
 0x14f   :  { %2535 = vmatpush3.msra.mxu1 %v3253_v18  ;;  %2493 = vmatprep.subr.mxu0 %v3224_v52 }
 0x150   :  { %2537 = vmatmul.mubr.f32.vlgmr.msra.gmra.mxu1 %v754_v8  ;;  %2574 = vmatprep.subr.mxu1 %v3059_v40 }
 0x151   :  { %2494 = vmatpush3.msra.mxu0 %v3224_v52  ;;  %2575 = vmatpush3.msra.mxu1 %v3059_v40  ;;  %v3821_v40 = vld [vmem:[#allocation13_spill] sm:$0xff]  ;;  %v3475_v52 = vand.u32 4294901760, %v3456_v27 }
 0x152   :  { %2606 = vmatprep.mubr.f32.mxu1 %v3282_v7  ;;  %2495 = vmatprep.subr.mxu0 %v3237_v2 }
 0x153   :  { %2576 = vmatprep.subr.mxu1 %v3063_v41  ;;  %2496 = vmatpush3.msra.mxu0 %v3237_v2  ;;  %v1503_v32 = vsub.f32 %v3456_v27, %v3475_v52 }
 0x154   :  { %2577 = vmatpush3.msra.mxu1 %v3063_v41  ;;  %2497 = vmatprep.subr.mxu0 %v3251_v14  ;;  %v3822_v41 = vld [vmem:[#allocation14_spill] sm:$0xff] }
 0x155   :  { %2578 = vmatprep.subr.mxu1 %v3107_v51  ;;  %2498 = vmatpush3.msra.mxu0 %v3251_v14  ;;  %v1504_v30 = vand.u32 4294901760, %v1503_v32 }
 0x156   :  { %2579 = vmatpush3.msra.mxu1 %v3107_v51  ;;  %2499 = vmatprep.subr.mxu0 %v3263_v29  ;;  %v3827_v51 = vld [vmem:[#allocation19_spill] sm:$0xff] }
 0x157   :  { %2580 = vmatprep.subr.mxu1 %v3112_v54  ;;  %2500 = vmatpush3.msra.mxu0 %v3263_v29 }
 0x158   :  { %2581 = vmatpush3.msra.mxu1 %v3112_v54  ;;  %2502 = vmatmul.mubr.f32.vlgmr.msra.gmra.mxu0 %v3280_v0  ;;  %v1362_v54 = vld [vmem:[#allocation7 + $0x78] sm:$0xff] }
 0x159   :  { %2539 = vmatprep.subr.mxu0 %v3079_v44  ;;  %2582 = vmatprep.subr.mxu1 %v3122_v58 }
 0x15a   :  { %2540 = vmatpush3.msra.mxu0 %v3079_v44  ;;  %2571 = vmatprep.mubr.f32.mxu0 %v3282_v7  ;;  %v3825_v44 = vld [vmem:[#allocation17_spill] sm:$0xff]  ;;  %v3518_v7 = vand.u32 4294901760, %v3511_v49 }
 0x15b   :  { %2583 = vmatpush3.msra.mxu1 %v3122_v58  ;;  %2541 = vmatprep.subr.mxu0 %v3083_v45  ;;  %v1360_v58 = vld [vmem:[#allocation7 + $0x68] sm:$0xff] }
 0x15c   :  { %2584 = vmatprep.subr.mxu1 %v3134_v63  ;;  %2542 = vmatpush3.msra.mxu0 %v3083_v45  ;;  %v3826_v45 = vld [vmem:[#allocation18_spill] sm:$0xff]  ;;  %3829 = vst [vmem:[#allocation13_spill] sm:$0xff] %v3518_v7  ;;  %v1524_v26 = vsub.f32 %v3511_v49, %v3518_v7 }
 0x15d   :  { %2585 = vmatpush3.msra.mxu1 %v3134_v63  ;;  %2543 = vmatprep.subr.mxu0 %v3117_v56  ;;  %v3428_v63 = vand.u32 4294901760, %v1360_v58 }
 0x15e   :  { %2586 = vmatprep.subr.mxu1 %v3147_v5  ;;  %2544 = vmatpush3.msra.mxu0 %v3117_v56  ;;  %v3424_v56 = vand.u32 4294901760, %v1362_v54 }
 0x15f   :  { %2587 = vmatpush3.msra.mxu1 %v3147_v5  ;;  %2545 = vmatprep.subr.mxu0 %v3129_v61  ;;  %v1357_v5 = vld [vmem:[#allocation7 + $0x50] sm:$0xff] }
 0x160   :  { %2588 = vmatprep.subr.mxu1 %v3155_v10  ;;  %2546 = vmatpush3.msra.mxu0 %v3129_v61  ;;  %v1359_v61 = vld [vmem:[#allocation7 + $0x60] sm:$0xff]  ;;  %v3438_v15 = vand.u32 4294901760, %v1357_v5 }
 0x161   :  { %2589 = vmatpush3.msra.mxu1 %v3155_v10  ;;  %2547 = vmatprep.subr.mxu0 %v3141_v3  ;;  %v3433_v10 = vsub.f32 %v1362_v54, %v3424_v56 }
 0x162   :  { %2590 = vmatprep.subr.mxu1 %v3166_v16  ;;  %2548 = vmatpush3.msra.mxu0 %v3141_v3  ;;  %v3430_v3 = vand.u32 4294901760, %v1359_v61 }
 0x163   :  { %2591 = vmatpush3.msra.mxu1 %v3166_v16  ;;  %2549 = vmatprep.subr.mxu0 %v3153_v9 }
 0x164   :  { %2592 = vmatprep.subr.mxu1 %v3179_v22  ;;  %2550 = vmatpush3.msra.mxu0 %v3153_v9  ;;  %v1356_v9 = vld [vmem:[#allocation7 + $0x48] sm:$0xff]  ;;  %v3449_v21 = vsub.f32 %v1359_v61, %v3430_v3 }
 0x165   :  { %2593 = vmatpush3.msra.mxu1 %v3179_v22  ;;  %2551 = vmatprep.subr.mxu0 %v3170_v17  ;;  %v3440_v16 = vand.u32 4294901760, %v1356_v9  ;;  %v3453_v22 = vand.u32 4294901760, %v3433_v10 }
 0x166   :  { %2594 = vmatprep.subr.mxu1 %v3193_v28  ;;  %2552 = vmatpush3.msra.mxu0 %v3170_v17  ;;  %v3443_v17 = vsub.f32 %v1361_v57, %v3426_v62 }
 0x167   :  { %2595 = vmatpush3.msra.mxu1 %v3193_v28  ;;  %2553 = vmatprep.subr.mxu0 %v3174_v20  ;;  %v3460_v28 = vsub.f32 %v1357_v5, %v3438_v15  ;;  %v1475_v47 = vsub.f32 %v3433_v10, %v3453_v22 }
 0x168   :  { %2596 = vmatprep.subr.mxu1 %v3206_v35  ;;  %2554 = vmatpush3.msra.mxu0 %v3174_v20  ;;  %v3446_v20 = vsub.f32 %v1360_v58, %v3428_v63  ;;  %v3463_v34 = vand.u32 4294901760, %v3443_v17 }
 0x169   :  { %2597 = vmatpush3.msra.mxu1 %v3206_v35  ;;  %2555 = vmatprep.subr.mxu0 %v3821_v40  ;;  %v1476_v13 = vand.u32 4294901760, %v1475_v47 }
 0x16a   :  { %2598 = vmatprep.subr.mxu1 %v3214_v46  ;;  %2556 = vmatpush3.msra.mxu0 %v3821_v40  ;;  %v3466_v35 = vand.u32 4294901760, %v3446_v20  ;;  %v1482_v2 = vsub.f32 %v3443_v17, %v3463_v34  ;;  %v1351_v40 = vld [vmem:[#allocation7 + $0x20] sm:$0xff] }
 0x16b   :  { %2599 = vmatpush3.msra.mxu1 %v3214_v46  ;;  %2557 = vmatprep.subr.mxu0 %v3822_v41  ;;  %v3469_v46 = vand.u32 4294901760, %v3449_v21 }
 0x16c   :  { %2600 = vmatprep.subr.mxu1 %v3226_v55  ;;  %2558 = vmatpush3.msra.mxu0 %v3822_v41  ;;  %v1483_v25 = vand.u32 4294901760, %v1482_v2  ;;  %v1525_v41 = vand.u32 4294901760, %v1524_v26  ;;  %v3567_v2 = vand.u32 4294901760, %v1349_v4 }
 0x16d   :  { %2601 = vmatpush3.msra.mxu1 %v3226_v55  ;;  %2559 = vmatprep.subr.mxu0 %v3823_v42  ;;  %v3479_v55 = vsub.f32 %v1356_v9, %v3440_v16  ;;  %v1496_v14 = vsub.f32 %v3449_v21, %v3469_v46 }
 0x16e   :  { %2602 = vmatprep.subr.mxu1 %v3239_v6  ;;  %2560 = vmatpush3.msra.mxu0 %v3823_v42 }
 0x16f   :  { %2603 = vmatpush3.msra.mxu1 %v3239_v6  ;;  %2561 = vmatprep.subr.mxu0 %v3824_v43  ;;  %v1489_v6 = vsub.f32 %v3446_v20, %v3466_v35  ;;  %v3496_v19 = vand.u32 4294901760, %v3479_v55  ;;  %v1497_v23 = vand.u32 4294901760, %v1496_v14 }
 0x170   :  { %2604 = vmatprep.subr.mxu1 %v3253_v18  ;;  %2562 = vmatpush3.msra.mxu0 %v3824_v43  ;;  %v3542_v43 = vand.u32 4294901760, %v3533_v59 }
 0x171   :  { %2605 = vmatpush3.msra.mxu1 %v3253_v18  ;;  %2563 = vmatprep.subr.mxu0 %v3825_v44  ;;  %v3489_v18 = vand.u32 4294901760, %v3460_v28  ;;  %v1490_v29 = vand.u32 4294901760, %v1489_v6  ;;  %v1517_v37 = vsub.f32 %v3479_v55, %v3496_v19 }
 0x172   :  { %2607 = vmatmul.mubr.f32.vlgmr.msra.gmra.mxu1 %v3277_v50  ;;  %2564 = vmatpush3.msra.mxu0 %v3825_v44  ;;  %3831 = vst [vmem:[#allocation15_spill] sm:$0xff] %v3542_v43  ;;  %v3545_v44 = vsub.f32 %v1352_v33, %v3535_v1  ;;  %v1538_v54 = vsub.f32 %v3533_v59, %v3542_v43 }
 0x173   :  { %2565 = vmatprep.subr.mxu0 %v3826_v45  ;;  %2644 = vmatprep.subr.mxu1 %v1476_v13  ;;  %v1510_v24 = vsub.f32 %v3460_v28, %v3489_v18  ;;  %v1518_v0 = vand.u32 4294901760, %v1517_v37 }
 0x174   :  { %2566 = vmatpush3.msra.mxu0 %v3826_v45  ;;  %2645 = vmatpush3.msra.mxu1 %v1476_v13  ;;  %v3548_v45 = vand.u32 4294901760, %v1351_v40  ;;  %v3554_v57 = vand.u32 4294901760, %v3545_v44  ;;  %v1539_v5 = vand.u32 4294901760, %v1538_v54  ;;  %v1348_v13 = vld [vmem:[#allocation7 + $0x8] sm:$0xff] }
 0x175   :  { %2567 = vmatprep.subr.mxu0 %v3827_v51  ;;  %2646 = vmatprep.subr.mxu1 %v1483_v25  ;;  %v1511_v48 = vand.u32 4294901760, %v1510_v24  ;;  %v3580_v32 = vand.u32 4294901760, %v1348_v13  ;;  %v1347_v24 = vld [vmem:[#allocation7] sm:$0xff] }
 0x176   :  { %2568 = vmatpush3.msra.mxu0 %v3827_v51  ;;  %2647 = vmatpush3.msra.mxu1 %v1483_v25  ;;  %v1350_v51 = vld [vmem:[#allocation7 + $0x18] sm:$0xff]  ;;  %3832 = vst [vmem:[#allocation16_spill] sm:$0xff] %v3554_v57  ;;  %v3559_v61 = vsub.f32 %v1351_v40, %v3548_v45  ;;  %v1545_v9 = vsub.f32 %v3545_v44, %v3554_v57 }
 0x177   :  { %2569 = vmatprep.subr.mxu0 %v3828_v53  ;;  %2648 = vmatprep.subr.mxu1 %v1490_v29  ;;  %v3556_v58 = vand.u32 4294901760, %v1350_v51  ;;  %v3592_v37 = vsub.f32 %v1348_v13, %v3580_v32 }
 0x178   :  { %2570 = vmatpush3.msra.mxu0 %v3828_v53  ;;  %2649 = vmatpush3.msra.mxu1 %v1490_v29  ;;  %v3571_v6 = vand.u32 4294901760, %v3559_v61  ;;  %v1546_v14 = vand.u32 4294901760, %v1545_v9  ;;  %v3578_v29 = vsub.f32 %v1349_v4, %v3567_v2 }
 0x179   :  { %2572 = vmatmul.mubr.f32.vlgmr.msra.gmra.mxu0 %v3277_v50  ;;  %2609 = vmatprep.subr.mxu0 %v3424_v56  ;;  %v3513_v50 = vand.u32 4294901760, %v1354_v38  ;;  %v3565_v47 = vsub.f32 %v1350_v51, %v3556_v58  ;;  %v3601_v33 = vand.u32 4294901760, %v3592_v37 }
 0x17a   :  { %2610 = vmatpush3.msra.mxu0 %v3424_v56  ;;  %2650 = vmatprep.subr.mxu1 %v1497_v23  ;;  %3833 = vst [vmem:[#allocation17_spill] sm:$0xff] %v3571_v6 }
 0x17b   :  { %2611 = vmatprep.subr.mxu0 %v3426_v62  ;;  %2651 = vmatpush3.msra.mxu1 %v1497_v23  ;;  %v3521_v8 = vsub.f32 %v1354_v38, %v3513_v50  ;;  %v3575_v25 = vand.u32 4294901760, %v3565_v47  ;;  %v1552_v23 = vsub.f32 %v3559_v61, %v3571_v6  ;;  %v3594_v38 = vand.u32 4294901760, %v1347_v24  ;;  %3836 = vst [vmem:[#allocation20_spill] sm:$0xff] %v3601_v33 }
 0x17c   :  { %2612 = vmatpush3.msra.mxu0 %v3426_v62  ;;  %2652 = vmatprep.subr.mxu1 %v1504_v30 }
 0x17d   :  { %2613 = vmatprep.subr.mxu0 %v3428_v63  ;;  %2653 = vmatpush3.msra.mxu1 %v1504_v30  ;;  %v3530_v39 = vand.u32 4294901760, %v3521_v8  ;;  %3834 = vst [vmem:[#allocation18_spill] sm:$0xff] %v3575_v25  ;;  %v1559_v31 = vsub.f32 %v3565_v47, %v3575_v25  ;;  %v3589_v30 = vand.u32 4294901760, %v3578_v29  ;;  %v3604_v26 = vsub.f32 %v1347_v24, %v3594_v38 }
 0x17e   :  { %2614 = vmatpush3.msra.mxu0 %v3428_v63  ;;  %2654 = vmatprep.subr.mxu1 %v1511_v48 }
 0x17f   :  { %2615 = vmatprep.subr.mxu0 %v3430_v3  ;;  %3830 = vst [vmem:[#allocation14_spill] sm:$0xff] %v3530_v39  ;;  %2655 = vmatpush3.msra.mxu1 %v1511_v48  ;;  %v1531_v42 = vsub.f32 %v3521_v8, %v3530_v39  ;;  %3835 = vst [vmem:[#allocation19_spill] sm:$0xff] %v3589_v30  ;;  %v1553_v48 = vand.u32 4294901760, %v1552_v23  ;;  %v1560_v60 = vand.u32 4294901760, %v1559_v31 }
 0x180   :  { %2616 = vmatpush3.msra.mxu0 %v3430_v3  ;;  %2656 = vmatprep.subr.mxu1 %v1518_v0 }
 0x181   :  { %2617 = vmatprep.subr.mxu0 %v3436_v11  ;;  %2657 = vmatpush3.msra.mxu1 %v1518_v0  ;;  %v1532_v53 = vand.u32 4294901760, %v1531_v42  ;;  %v1566_v0 = vsub.f32 %v3578_v29, %v3589_v30  ;;  %v3611_v42 = vand.u32 4294901760, %v3604_v26 }
 0x182   :  { %2618 = vmatpush3.msra.mxu0 %v3436_v11  ;;  %2658 = vmatprep.subr.mxu1 %v1525_v41 }
 0x183   :  { %2619 = vmatprep.subr.mxu0 %v3438_v15  ;;  %2659 = vmatpush3.msra.mxu1 %v1525_v41  ;;  %v1567_v40 = vand.u32 4294901760, %v1566_v0  ;;  %v1573_v41 = vsub.f32 %v3592_v37, %v3601_v33  ;;  %3837 = vst [vmem:[#allocation21_spill] sm:$0xff] %v3611_v42 }
 0x184   :  { %2620 = vmatpush3.msra.mxu0 %v3438_v15  ;;  %2660 = vmatprep.subr.mxu1 %v1532_v53 }
 0x185   :  { %2621 = vmatprep.subr.mxu0 %v3440_v16  ;;  %2661 = vmatpush3.msra.mxu1 %v1532_v53  ;;  %v1574_v51 = vand.u32 4294901760, %v1573_v41  ;;  %v1580_v53 = vsub.f32 %v3604_v26, %v3611_v42 }
 0x186   :  { %2622 = vmatpush3.msra.mxu0 %v3440_v16  ;;  %2662 = vmatprep.subr.mxu1 %v1539_v5 }
 0x187   :  { %2623 = vmatprep.subr.mxu0 %v3506_v36  ;;  %2663 = vmatpush3.msra.mxu1 %v1539_v5  ;;  %v1581_v54 = vand.u32 4294901760, %v1580_v53  ;;  %v2077_v5 = vld [vmem:[#allocation6] ss:$0 sm:$0xff] }
 0x188   :  { %2624 = vmatpush3.msra.mxu0 %v3506_v36  ;;  %2664 = vmatprep.subr.mxu1 %v1546_v14 }
 0x189   :  { %2625 = vmatprep.subr.mxu0 %v3513_v50  ;;  %2665 = vmatpush3.msra.mxu1 %v1546_v14 }
 0x18a   :  { %2626 = vmatpush3.msra.mxu0 %v3513_v50  ;;  %2666 = vmatprep.subr.mxu1 %v1553_v48 }
 0x18b   :  { %2627 = vmatprep.subr.mxu0 %v3523_v12  ;;  %2667 = vmatpush3.msra.mxu1 %v1553_v48 }
 0x18c   :  { %2628 = vmatpush3.msra.mxu0 %v3523_v12  ;;  %2668 = vmatprep.subr.mxu1 %v1560_v60 }
 0x18d   :  { %2629 = vmatprep.subr.mxu0 %v3535_v1  ;;  %2669 = vmatpush3.msra.mxu1 %v1560_v60 }
 0x18e   :  { %2630 = vmatpush3.msra.mxu0 %v3535_v1  ;;  %2670 = vmatprep.subr.mxu1 %v1567_v40 }
 0x18f   :  { %2631 = vmatprep.subr.mxu0 %v3548_v45  ;;  %2671 = vmatpush3.msra.mxu1 %v1567_v40 }
 0x190   :  { %2632 = vmatpush3.msra.mxu0 %v3548_v45  ;;  %2672 = vmatprep.subr.mxu1 %v1574_v51 }
 0x191   :  { %2633 = vmatprep.subr.mxu0 %v3556_v58  ;;  %2673 = vmatpush3.msra.mxu1 %v1574_v51 }
 0x192   :  { %2634 = vmatpush3.msra.mxu0 %v3556_v58  ;;  %2674 = vmatprep.subr.mxu1 %v1581_v54 }
 0x193   :  { %2635 = vmatprep.subr.mxu0 %v3567_v2  ;;  %2675 = vmatpush3.msra.mxu1 %v1581_v54 }
 0x194   :  { %2636 = vmatpush3.msra.mxu0 %v3567_v2  ;;  %2714 = vmatprep.subr.mxu1 %v3424_v56 }
 0x195   :  { %2637 = vmatprep.subr.mxu0 %v3580_v32 }
 0x196   :  { %2638 = vmatpush3.msra.mxu0 %v3580_v32 }
 0x197   :  { %2639 = vmatprep.subr.mxu0 %v3594_v38 }
 0x198   :  { %2640 = vmatpush3.msra.mxu0 %v3594_v38 }
 0x199   :  { %2679 = vmatprep.subr.mxu0 %v3433_v10 }
 0x1ef   :  { %v2468_v9 = vpop.f32.mrf.mxu1 }
 0x1f1   :  { %v909_v31 = vpop.f32.mrf.mxu1 }
 0x1f7   :  { %v2433_v4 = vpop.f32.mrf.mxu0 }
 0x1f8   :  { %v759_v14 = vadd.f32 %v2433_v4, %v2077_v5 }
 0x1f9   :  { %v748_v13 = vpop.f32.mrf.mxu0 }
 0x1fa   :  { %v749_v24 = vadd.f32 %v2077_v5, %v748_v13  ;;  %v916_v48 = vadd.f32 %v2468_v9, %v759_v14 }
 0x1fc   :  { %v910_v40 = vadd.f32 %v909_v31, %v749_v24 }
 0x210   :  { %v2538_v60 = vpop.f32.mrf.mxu1 }
 0x212   :  { %v1115_v42 = vpop.f32.mrf.mxu1 }
 0x218   :  { %v2503_v23 = vpop.f32.mrf.mxu0 }
 0x219   :  { %v1027_v41 = vadd.f32 %v2503_v23, %v916_v48 }
 0x21a   :  { %v1019_v0 = vpop.f32.mrf.mxu0 }
 0x21b   :  { %v1020_v53 = vadd.f32 %v1019_v0, %v910_v40  ;;  %v1124_v51 = vadd.f32 %v2538_v60, %v1027_v41 }
 0x21d   :  { %v1116_v25 = vadd.f32 %v1115_v42, %v1020_v53 }
 0x232   :  { %v2608_v33 = vpop.f32.mrf.mxu1 }
 0x234   :  { %v1335_v39 = vpop.f32.mrf.mxu1 }
 0x239   :  { %v2573_v54 = vpop.f32.mrf.mxu0 }
 0x23a   :  { %v1249_v30 = vadd.f32 %v2573_v54, %v1124_v51 }
 0x23b   :  { %v1242_v6 = vpop.f32.mrf.mxu0 }
 0x23c   :  { %v1342_v57 = vadd.f32 %v2608_v33, %v1249_v30  ;;  %v1243_v43 = vadd.f32 %v1242_v6, %v1116_v25 }
 0x23e   :  { %v1346_v4 = vmax.f32 %v1342_v57, 0.0  ;;  %v1336_v7 = vadd.f32 %v1335_v39, %v1243_v43 }
 0x240   :  { %v3618_v5 = vand.u32 4294901760, %v1346_v4  ;;  %v1345_v9 = vmax.f32 %v1336_v7, 0.0 }
 0x242   :  { %v3621_v13 = vsub.f32 %v1346_v4, %v3618_v5  ;;  %v3623_v14 = vand.u32 4294901760, %v1345_v9 }
 0x244   :  { %v1463_v23 = vand.u32 4294901760, %v3621_v13  ;;  %v1452_v24 = vsub.f32 %v1345_v9, %v3623_v14  ;;  %2676 = vmatprep.mubr.f32.mxu1 %v3623_v14 }
 0x245   :  { %2677 = vmatmul.mubr.f32.vlgmr.msra.gmra.mxu1 %v3618_v5 }
 0x246   :  { %2715 = vmatpush3.msra.mxu1 %v3424_v56  ;;  %v1453_v57 = vand.u32 4294901760, %v1452_v24  ;;  %v1464_v7 = vsub.f32 %v3621_v13, %v1463_v23 }
 0x247   :  { %2716 = vmatprep.subr.mxu1 %v3426_v62 }
 0x248   :  { %2717 = vmatpush3.msra.mxu1 %v3426_v62  ;;  %2746 = vmatprep.mubr.f32.mxu1 %v1453_v57  ;;  %v1454_v39 = vsub.f32 %v1452_v24, %v1453_v57  ;;  %v1465_v6 = vand.u32 4294901760, %v1464_v7 }
 0x249   :  { %2718 = vmatprep.subr.mxu1 %v3428_v63 }
 0x24a   :  { %2719 = vmatpush3.msra.mxu1 %v3428_v63  ;;  %v1455_v43 = vand.u32 4294901760, %v1454_v39 }
 0x24b   :  { %2720 = vmatprep.subr.mxu1 %v3430_v3 }
 0x24c   :  { %2721 = vmatpush3.msra.mxu1 %v3430_v3  ;;  %2641 = vmatprep.mubr.f32.mxu0 %v1455_v43 }
 0x24d   :  { %2722 = vmatprep.subr.mxu1 %v3436_v11  ;;  %2642 = vmatmul.mubr.f32.vlgmr.msra.gmra.mxu0 %v1465_v6 }
 0x24e   :  { %2680 = vmatpush3.msra.mxu0 %v3433_v10  ;;  %2723 = vmatpush3.msra.mxu1 %v3436_v11  ;;  %v3842_v10 = vld [vmem:[#allocation17_spill] sm:$0xff] }
 0x24f   :  { %2681 = vmatprep.subr.mxu0 %v3443_v17  ;;  %2711 = vmatprep.mubr.f32.mxu0 %v1452_v24 }
 0x250   :  { %2724 = vmatprep.subr.mxu1 %v3438_v15  ;;  %2682 = vmatpush3.msra.mxu0 %v3443_v17  ;;  %v3846_v17 = vld [vmem:[#allocation21_spill] sm:$0xff] }
 0x251   :  { %2725 = vmatpush3.msra.mxu1 %v3438_v15  ;;  %2683 = vmatprep.subr.mxu0 %v3446_v20 }
 0x252   :  { %2726 = vmatprep.subr.mxu1 %v3440_v16  ;;  %2684 = vmatpush3.msra.mxu0 %v3446_v20 }
 0x253   :  { %2727 = vmatpush3.msra.mxu1 %v3440_v16  ;;  %2685 = vmatprep.subr.mxu0 %v3449_v21 }
 0x254   :  { %2728 = vmatprep.subr.mxu1 %v3506_v36  ;;  %2686 = vmatpush3.msra.mxu0 %v3449_v21  ;;  %v2078_v21 = vld [vmem:[#allocation9] ss:$0 sm:$0xff] }
 0x255   :  { %2729 = vmatpush3.msra.mxu1 %v3506_v36  ;;  %2687 = vmatprep.subr.mxu0 %v3456_v27 }
 0x256   :  { %2730 = vmatprep.subr.mxu1 %v3513_v50  ;;  %2688 = vmatpush3.msra.mxu0 %v3456_v27 }
 0x257   :  { %2731 = vmatpush3.msra.mxu1 %v3513_v50  ;;  %2689 = vmatprep.subr.mxu0 %v3460_v28 }
 0x258   :  { %2732 = vmatprep.subr.mxu1 %v3523_v12  ;;  %2690 = vmatpush3.msra.mxu0 %v3460_v28 }
 0x259   :  { %2733 = vmatpush3.msra.mxu1 %v3523_v12  ;;  %2691 = vmatprep.subr.mxu0 %v3479_v55 }
 0x25a   :  { %2734 = vmatprep.subr.mxu1 %v3535_v1  ;;  %2692 = vmatpush3.msra.mxu0 %v3479_v55 }
 0x25b   :  { %2735 = vmatpush3.msra.mxu1 %v3535_v1  ;;  %2693 = vmatprep.subr.mxu0 %v3511_v49 }
 0x25c   :  { %2736 = vmatprep.subr.mxu1 %v3548_v45  ;;  %2694 = vmatpush3.msra.mxu0 %v3511_v49 }
 0x25d   :  { %2737 = vmatpush3.msra.mxu1 %v3548_v45  ;;  %2695 = vmatprep.subr.mxu0 %v3521_v8 }
 0x25e   :  { %2738 = vmatprep.subr.mxu1 %v3556_v58  ;;  %2696 = vmatpush3.msra.mxu0 %v3521_v8 }
 0x25f   :  { %2739 = vmatpush3.msra.mxu1 %v3556_v58  ;;  %2697 = vmatprep.subr.mxu0 %v3533_v59 }
 0x260   :  { %2740 = vmatprep.subr.mxu1 %v3567_v2  ;;  %2698 = vmatpush3.msra.mxu0 %v3533_v59 }
 0x261   :  { %2741 = vmatpush3.msra.mxu1 %v3567_v2  ;;  %2699 = vmatprep.subr.mxu0 %v3545_v44 }
 0x262   :  { %2742 = vmatprep.subr.mxu1 %v3580_v32  ;;  %2700 = vmatpush3.msra.mxu0 %v3545_v44 }
 0x263   :  { %2743 = vmatpush3.msra.mxu1 %v3580_v32  ;;  %2701 = vmatprep.subr.mxu0 %v3559_v61 }
 0x264   :  { %2744 = vmatprep.subr.mxu1 %v3594_v38  ;;  %2702 = vmatpush3.msra.mxu0 %v3559_v61 }
 0x265   :  { %2745 = vmatpush3.msra.mxu1 %v3594_v38  ;;  %2703 = vmatprep.subr.mxu0 %v3565_v47 }
 0x266   :  { %2747 = vmatmul.mubr.f32.vlgmr.msra.gmra.mxu1 %v1463_v23  ;;  %2784 = vmatprep.subr.mxu1 %v3424_v56 }
 0x267   :  { %2704 = vmatpush3.msra.mxu0 %v3565_v47  ;;  %2785 = vmatpush3.msra.mxu1 %v3424_v56  ;;  %v3838_v56 = vld [vmem:[#allocation13_spill] sm:$0xff] }
 0x268   :  { %2816 = vmatprep.mubr.f32.mxu1 %v3623_v14  ;;  %2705 = vmatprep.subr.mxu0 %v3578_v29 }
 0x269   :  { %2786 = vmatprep.subr.mxu1 %v3426_v62  ;;  %2706 = vmatpush3.msra.mxu0 %v3578_v29 }
 0x26a   :  { %2787 = vmatpush3.msra.mxu1 %v3426_v62  ;;  %2707 = vmatprep.subr.mxu0 %v3592_v37  ;;  %v3839_v62 = vld [vmem:[#allocation14_spill] sm:$0xff] }
 0x26b   :  { %2788 = vmatprep.subr.mxu1 %v3428_v63  ;;  %2708 = vmatpush3.msra.mxu0 %v3592_v37 }
 0x26c   :  { %2789 = vmatpush3.msra.mxu1 %v3428_v63  ;;  %2709 = vmatprep.subr.mxu0 %v3604_v26  ;;  %v3840_v63 = vld [vmem:[#allocation15_spill] sm:$0xff] }
 0x26d   :  { %2790 = vmatprep.subr.mxu1 %v3430_v3  ;;  %2710 = vmatpush3.msra.mxu0 %v3604_v26 }
 0x26e   :  { %2791 = vmatpush3.msra.mxu1 %v3430_v3  ;;  %2712 = vmatmul.mubr.f32.vlgmr.msra.gmra.mxu0 %v3621_v13  ;;  %v3841_v3 = vld [vmem:[#allocation16_spill] sm:$0xff] }
 0x26f   :  { %2749 = vmatprep.subr.mxu0 %v3453_v22  ;;  %2792 = vmatprep.subr.mxu1 %v3436_v11 }
 0x270   :  { %2750 = vmatpush3.msra.mxu0 %v3453_v22  ;;  %2781 = vmatprep.mubr.f32.mxu0 %v3623_v14 }
 0x271   :  { %2793 = vmatpush3.msra.mxu1 %v3436_v11  ;;  %2751 = vmatprep.subr.mxu0 %v3463_v34  ;;  %v3843_v11 = vld [vmem:[#allocation18_spill] sm:$0xff] }
 0x272   :  { %2794 = vmatprep.subr.mxu1 %v3438_v15  ;;  %2752 = vmatpush3.msra.mxu0 %v3463_v34 }
 0x273   :  { %2795 = vmatpush3.msra.mxu1 %v3438_v15  ;;  %2753 = vmatprep.subr.mxu0 %v3466_v35  ;;  %v3844_v15 = vld [vmem:[#allocation19_spill] sm:$0xff] }
 0x274   :  { %2796 = vmatprep.subr.mxu1 %v3440_v16  ;;  %2754 = vmatpush3.msra.mxu0 %v3466_v35 }
 0x275   :  { %2797 = vmatpush3.msra.mxu1 %v3440_v16  ;;  %2755 = vmatprep.subr.mxu0 %v3469_v46  ;;  %v3845_v16 = vld [vmem:[#allocation20_spill] sm:$0xff] }
 0x276   :  { %2798 = vmatprep.subr.mxu1 %v3506_v36  ;;  %2756 = vmatpush3.msra.mxu0 %v3469_v46 }
 0x277   :  { %2799 = vmatpush3.msra.mxu1 %v3506_v36  ;;  %2757 = vmatprep.subr.mxu0 %v3475_v52 }
 0x278   :  { %2800 = vmatprep.subr.mxu1 %v3513_v50  ;;  %2758 = vmatpush3.msra.mxu0 %v3475_v52 }
 0x279   :  { %2801 = vmatpush3.msra.mxu1 %v3513_v50  ;;  %2759 = vmatprep.subr.mxu0 %v3489_v18 }
 0x27a   :  { %2802 = vmatprep.subr.mxu1 %v3523_v12  ;;  %2760 = vmatpush3.msra.mxu0 %v3489_v18 }
 0x27b   :  { %2803 = vmatpush3.msra.mxu1 %v3523_v12  ;;  %2761 = vmatprep.subr.mxu0 %v3496_v19 }
 0x27c   :  { %2804 = vmatprep.subr.mxu1 %v3535_v1  ;;  %2762 = vmatpush3.msra.mxu0 %v3496_v19 }
 0x27d   :  { %2805 = vmatpush3.msra.mxu1 %v3535_v1  ;;  %2763 = vmatprep.subr.mxu0 %v3838_v56 }
 0x27e   :  { %2806 = vmatprep.subr.mxu1 %v3548_v45  ;;  %2764 = vmatpush3.msra.mxu0 %v3838_v56 }
 0x27f   :  { %2807 = vmatpush3.msra.mxu1 %v3548_v45  ;;  %2765 = vmatprep.subr.mxu0 %v3839_v62 }
 0x280   :  { %2808 = vmatprep.subr.mxu1 %v3556_v58  ;;  %2766 = vmatpush3.msra.mxu0 %v3839_v62 }
 0x281   :  { %2809 = vmatpush3.msra.mxu1 %v3556_v58  ;;  %2767 = vmatprep.subr.mxu0 %v3840_v63 }
 0x282   :  { %2810 = vmatprep.subr.mxu1 %v3567_v2  ;;  %2768 = vmatpush3.msra.mxu0 %v3840_v63 }
 0x283   :  { %2811 = vmatpush3.msra.mxu1 %v3567_v2  ;;  %2769 = vmatprep.subr.mxu0 %v3841_v3 }
 0x284   :  { %2812 = vmatprep.subr.mxu1 %v3580_v32  ;;  %2770 = vmatpush3.msra.mxu0 %v3841_v3 }
 0x285   :  { %2813 = vmatpush3.msra.mxu1 %v3580_v32  ;;  %2771 = vmatprep.subr.mxu0 %v3842_v10 }
 0x286   :  { %2814 = vmatprep.subr.mxu1 %v3594_v38  ;;  %2772 = vmatpush3.msra.mxu0 %v3842_v10 }
 0x287   :  { %2815 = vmatpush3.msra.mxu1 %v3594_v38  ;;  %2773 = vmatprep.subr.mxu0 %v3843_v11 }
 0x288   :  { %2817 = vmatmul.mubr.f32.vlgmr.msra.gmra.mxu1 %v3618_v5  ;;  %2774 = vmatpush3.msra.mxu0 %v3843_v11 }
 0x289   :  { %2775 = vmatprep.subr.mxu0 %v3844_v15 }
 0x28a   :  { %2776 = vmatpush3.msra.mxu0 %v3844_v15 }
 0x28b   :  { %2777 = vmatprep.subr.mxu0 %v3845_v16 }
 0x28c   :  { %2778 = vmatpush3.msra.mxu0 %v3845_v16 }
 0x28d   :  { %2779 = vmatprep.subr.mxu0 %v3846_v17 }
 0x28e   :  { %2780 = vmatpush3.msra.mxu0 %v3846_v17 }
 0x28f   :  { %2782 = vmatmul.mubr.f32.vlgmr.msra.gmra.mxu0 %v3618_v5 }
 0x305   :  { %v2678_v22 = vpop.f32.mrf.mxu1 }
 0x307   :  { %v1618_v46 = vpop.f32.mrf.mxu1 }
 0x30d   :  { %v2643_v20 = vpop.f32.mrf.mxu0 }
 0x30e   :  { %v1468_v28 = vadd.f32 %v2643_v20, %v2078_v21 }
 0x30f   :  { %v1457_v27 = vpop.f32.mrf.mxu0 }
 0x310   :  { %v1458_v35 = vadd.f32 %v2078_v21, %v1457_v27  ;;  %v1625_v52 = vadd.f32 %v2678_v22, %v1468_v28 }
 0x312   :  { %v1619_v36 = vadd.f32 %v1618_v46, %v1458_v35 }
 0x326   :  { %v2748_v55 = vpop.f32.mrf.mxu1 }
 0x328   :  { %v1824_v50 = vpop.f32.mrf.mxu1 }
 0x32e   :  { %v2713_v34 = vpop.f32.mrf.mxu0 }
 0x32f   :  { %v1736_v19 = vadd.f32 %v2713_v34, %v1625_v52 }
 0x330   :  { %v1728_v18 = vpop.f32.mrf.mxu0 }
 0x331   :  { %v1729_v49 = vadd.f32 %v1728_v18, %v1619_v36  ;;  %v1833_v8 = vadd.f32 %v2748_v55, %v1736_v19 }
 0x333   :  { %v1825_v44 = vadd.f32 %v1824_v50, %v1729_v49 }
 0x348   :  { %v2818_v12 = vpop.f32.mrf.mxu1 }
 0x34a   :  { %v2044_v47 = vpop.f32.mrf.mxu1 }
 0x34f   :  { %v2783_v59 = vpop.f32.mrf.mxu0 }
 0x350   :  { %v1958_v1 = vadd.f32 %v2783_v59, %v1833_v8 }
 0x351   :  { %v1951_v45 = vpop.f32.mrf.mxu0 }
 0x352   :  { %v2051_v58 = vadd.f32 %v2818_v12, %v1958_v1  ;;  %v1952_v61 = vadd.f32 %v1951_v45, %v1825_v44 }
 0x354   :  { %v2080_v2 = vmul.f32 -1.442695, %v2051_v58  ;;  %v2045_v25 = vadd.f32 %v2044_v47, %v1952_v61 }
 0x356   :  { %2826 = vpow2.f32 %v2080_v2  ;;  %v2079_v29 = vmul.f32 -1.442695, %v2045_v25 }
 0x358   :  { %2828 = vpow2.f32 %v2079_v29 }
 0x363   :  { %v2827_v32 = vpop.eup %2826 }
 0x364   :  { %v2061_v30 = vadd.f32 1.0, %v2827_v32 }
 0x365   :  { %v2829_v37 = vpop.eup %2828 }
 0x366   :  { %2830 = vrcp.f32 %v2061_v30  ;;  %v2060_v38 = vadd.f32 1.0, %v2829_v37 }
 0x368   :  { %2832 = vrcp.f32 %v2060_v38 }
 0x373   :  { %v2831_v33 = vpop.eup %2830 }
 0x374   :  { %2068 = vst.msk [vmem:[%s3778_s7 + $0x8] sm:$0xff] %vm2066_vm1, %v2831_v33 }
 0x375   :  { %v2833_v26 = vpop.eup %2832 }
 0x376   :  { %2067 = vst.msk [vmem:[%s3778_s7] sm:$0xff] %vm2066_vm1, %v2833_v26 }
 0x377   :  { %2073 = vsyncpa [#allocation3], 1 }
 0x378   :  { %2074 = vsyncpa [#allocation5], 1 }
 0x379   :  { %2075 = vsyncpa [#allocation8], 1 }

</bundles_post_ra>
